<compile_context>
chip_gen: v6e
topology: v6e:2x2x1
jax: 0.10.0
libtpu: 0.0.40
codegen_flags: <defaults>
</compile_context>

<pallas_src>
import functools

import jax
import jax.numpy as jnp
from jax import lax
from jax.experimental import pallas as pl
from jax.experimental.pallas import tpu as pltpu

_LANE = 128
_SUBLANE = 8


def _round_up(v, m):
    return ((v + m - 1) // m) * m


def _vmem_capacity_bytes():
    """Physical per-core VMEM (128 MiB on v5e/v6e, 64 MiB on v7x)."""
    try:
        cap = int(pltpu.get_tpu_info().vmem_capacity_bytes)
        if cap > 0:
            return cap
    except Exception:
        pass
    return 64 << 20  # conservative (v7x-safe) fallback


# -----------------------------------------------------------------------------
# Kernels
# -----------------------------------------------------------------------------
def _head(h, w_ref, b_ref, o_ref, num_classes):
    """logits = h @ W_p + b_p; numerically-stable softmax over real classes."""
    logits = jnp.dot(h.astype(w_ref.dtype), w_ref[...],
                     preferred_element_type=jnp.float32)          # (tb, Cp)
    logits = logits + b_ref[...]
    m = jnp.max(logits, axis=-1, keepdims=True)
    col = lax.broadcasted_iota(jnp.int32, logits.shape, 1)
    # Padded classes contribute exactly 0 to the softmax.
    e = jnp.where(col < num_classes, jnp.exp(logits - m), 0.0)
    denom = jnp.sum(e, axis=-1, keepdims=True)
    o_ref[...] = (e / denom).astype(o_ref.dtype)                  # exact normalization


def _full_seq_kernel(x_ref, w_ref, b_ref, o_ref, *, inv_t, num_classes):
    """One batch tile with the whole sequence resident: no reduction grid axis.

    x_ref: (tb, T, D)   w_ref: (D, Cp)   b_ref: (1, Cp)   o_ref: (tb, Cp)
    """
    h = jnp.sum(x_ref[...], axis=1, dtype=jnp.float32) * inv_t
    _head(h, w_ref, b_ref, o_ref, num_classes)


def _chunked_seq_kernel(x_ref, w_ref, b_ref, o_ref, acc_ref, *,
                        inv_t, num_classes, seq_len, tk, ragged_t):
    """Fallback when a full-sequence batch tile does not fit the VMEM budget."""
    k = pl.program_id(1)

    @pl.when(k == 0)
    def _init():
        acc_ref[...] = jnp.zeros_like(acc_ref)

    xk = x_ref[...]
    if ragged_t:  # static Python flag: only compiled in when T % tk != 0
        row = lax.broadcasted_iota(jnp.int32, xk.shape, 1) + k * tk
        xk = jnp.where(row < seq_len, xk, jnp.zeros_like(xk))
    acc_ref[...] += jnp.sum(xk, axis=1, dtype=jnp.float32)

    @pl.when(k == pl.num_programs(1) - 1)
    def _finalize():
        _head(acc_ref[...] * inv_t, w_ref, b_ref, o_ref, num_classes)


# -----------------------------------------------------------------------------
# Wrapper
# -----------------------------------------------------------------------------
def prepare_params(weight, bias):
    """Pad + pre-transpose classifier params once (hoisted out of the hot path).

    weight: (C, D), bias: (C,)  ->  w_p: (D, Cp) f32, b_p: (1, Cp) f32.
    Only these tiny tensors are ever padded; x is never copied.
    """
    C, D = weight.shape
    c_pad = _round_up(max(C, _LANE), _LANE)
    w_p = jnp.zeros((D, c_pad), jnp.float32).at[:, :C].set(
        weight.astype(jnp.float32).T)
    b_p = jnp.zeros((1, c_pad), jnp.float32).at[0, :C].set(
        bias.astype(jnp.float32))
    return w_p, b_p


def linear_classifier_forward_padded(x, w_p, b_p, *, num_classes, tb_max=512):
    """x: (B, T, D); w_p: (D, Cp); b_p: (1, Cp). Returns (B, C) softmax probs."""
    B, T, D = x.shape
    assert w_p.shape[0] == D
    c_pad = w_p.shape[1]
    itemsize = jnp.dtype(x.dtype).itemsize

    # ---- generation-aware VMEM budget ---------------------------------------
    vmem_cap = _vmem_capacity_bytes()
    vmem_limit = max(int(0.78 * vmem_cap), 32 << 20)   # ~100 MiB (v5e/v6e), ~50 MiB (v7x)
    w_resident = 2 * D * c_pad * 4                     # double-buffered f32 weights
    if w_resident > vmem_limit // 2:
        # TODO(synk): add a class-tile grid axis for very large C*D instead of raising.
        raise NotImplementedError("weight matrix too large to stay VMEM-resident")
    fixed = (w_resident
             + 2 * c_pad * 4                           # bias
             + 2 * tb_max * c_pad * 4                  # output tiles
             + tb_max * D * 4)                         # accumulator scratch
    # Budget for BOTH double-buffered x tiles (<= half of physical VMEM).
    x_budget = min(max(vmem_limit - fixed - (4 << 20), 2 << 20), vmem_cap // 2)

    # ---- tiling: shrink tb before tk; prefer contiguous full-T tiles --------
    full_row = T * D * itemsize                        # one batch row, whole sequence
    max_rows = x_budget // (2 * full_row)              # rows per double-buffered x tile
    if B <= max_rows and B < 16:
        tb, tk = B, T                                  # tiny batch: single full tile
    elif max_rows >= _SUBLANE:
        # Full-T path; force >=2 batch tiles for B >= 16 so both v7x TCs get work.
        tb = min(tb_max, (max_rows // _SUBLANE) * _SUBLANE,
                 _round_up(pl.cdiv(B, 2), _SUBLANE))
        tb = max(_SUBLANE, tb)
        tk = T
    else:
        # Full-T rows too big for the budget: chunk the sequence (reduction axis).
        tb = B if B < _SUBLANE else _SUBLANE
        tk = max(_SUBLANE,
                 (x_budget // (2 * tb * D * itemsize) // _SUBLANE) * _SUBLANE)
        tk = min(tk, T)

    nbt = pl.cdiv(B, tb)                               # ragged last tile is fine: rows
    out_shape = jax.ShapeDtypeStruct((B, c_pad), x.dtype)  # are independent, OOB writes dropped

    if tk == T:
        out = pl.pallas_call(
            functools.partial(_full_seq_kernel,
                              inv_t=1.0 / T, num_classes=num_classes),
            out_shape=out_shape,
            grid=(nbt,),
            in_specs=[
                pl.BlockSpec((tb, T, D), lambda i: (i, 0, 0)),
                pl.BlockSpec((D, c_pad), lambda i: (0, 0)),
                pl.BlockSpec((1, c_pad), lambda i: (0, 0)),
            ],
            out_specs=pl.BlockSpec((tb, c_pad), lambda i: (i, 0)),
            compiler_params=pltpu.CompilerParams(
                dimension_semantics=("parallel",),
                vmem_limit_bytes=vmem_limit),
        )(x, w_p, b_p)
    else:
        ntk = pl.cdiv(T, tk)
        out = pl.pallas_call(
            functools.partial(_chunked_seq_kernel,
                              inv_t=1.0 / T, num_classes=num_classes,
                              seq_len=T, tk=tk, ragged_t=(T % tk != 0)),
            out_shape=out_shape,
            grid=(nbt, ntk),
            in_specs=[
                pl.BlockSpec((tb, tk, D), lambda i, k: (i, k, 0)),
                pl.BlockSpec((D, c_pad), lambda i, k: (0, 0)),
                pl.BlockSpec((1, c_pad), lambda i, k: (0, 0)),
            ],
            out_specs=pl.BlockSpec((tb, c_pad), lambda i, k: (i, 0)),
            scratch_shapes=[pltpu.VMEM((tb, D), jnp.float32)],
            compiler_params=pltpu.CompilerParams(
                dimension_semantics=("parallel", "arbitrary"),
                vmem_limit_bytes=vmem_limit),
        )(x, w_p, b_p)

    return out[:, :num_classes]


def linear_classifier_forward(x, weight, bias, **kw):
    """Convenience wrapper: pads params and runs the forward in one call."""
    w_p, b_p = prepare_params(weight, bias)
    return linear_classifier_forward_padded(
        x, w_p, b_p, num_classes=weight.shape[0], **kw)


if __name__ == "__main__":
    # Small shapes consistent with the module's forward: (batch, seq, input_size)
    B, T, D, C = 2, 8, 32, 10

    key = jax.random.PRNGKey(0)
    kx, kw = jax.random.split(key)

    x = jax.random.normal(kx, (B, T, D), dtype=jnp.float32)
    # Deterministic parameter init matching the module: weight ~ N(0, 0.1), bias = 0.
    weight = 0.1 * jax.random.normal(kw, (C, D), dtype=jnp.float32)
    bias = jnp.zeros((C,), dtype=jnp.float32)

    # Parameter padding hoisted out of the per-call path (done once, reused).
    w_p, b_p = prepare_params(weight, bias)
    out = linear_classifier_forward_padded(x, w_p, b_p, num_classes=C)
    out = jax.block_until_ready(out)

    # Pure-JAX reference of the same forward pass.
    ref = jax.nn.softmax(jnp.mean(x, axis=1) @ weight.T + bias, axis=1)

    assert out.shape == (B, C)
    # Exact normalization now (plain divide, padded columns are exactly zero).
    assert jnp.allclose(jnp.sum(out, axis=1), 1.0, atol=1e-3)
    # f32 throughout; allow slack for TPU matmul pass precision on both sides.
    assert jnp.allclose(out, ref, atol=5e-3, rtol=0)

    print("KERNEL_OK")
</pallas_src>

<mosaic_0001>
module attributes {stable_mosaic.version = 11 : i64} {
  func.func @_full_seq_kernel(%arg0: i32, %arg1: memref<2x8x32xf32, #tpu.memory_space<vmem>>, %arg2: memref<32x128xf32, #tpu.memory_space<vmem>>, %arg3: memref<1x128xf32, #tpu.memory_space<vmem>>, %arg4: memref<2x128xf32, #tpu.memory_space<vmem>>) attributes {dimension_semantics = [#tpu.dimension_semantics<parallel>], iteration_bounds = array<i64: 1>, scalar_prefetch = 0 : i64, scratch_operands = 0 : i64, tpu.core_type = #tpu.core_type<tc>, window_params = [{transform_indices = @transform_0, window_bounds = array<i64: 2, 8, 32>}, {pipeline_mode = #tpu.pipeline_mode<synchronous>, transform_indices = @transform_1, window_bounds = array<i64: 32, 128>}, {pipeline_mode = #tpu.pipeline_mode<synchronous>, transform_indices = @transform_2, window_bounds = array<i64: 1, 128>}, {transform_indices = @transform_3, window_bounds = array<i64: 2, 128>}]} {
    %c0 = arith.constant 0 : index
    %c0_0 = arith.constant 0 : index
    %c0_1 = arith.constant 0 : index
    %0 = vector.load %arg1[%c0, %c0_0, %c0_1] : memref<2x8x32xf32, #tpu.memory_space<vmem>>, vector<2x8x32xf32>
    %cst = arith.constant dense<0.000000e+00> : vector<2x32xf32>
    %1 = vector.multi_reduction <add>, %0, %cst [1] : vector<2x8x32xf32> to vector<2x32xf32>
    %cst_2 = arith.constant 1.250000e-01 : f32
    %2 = vector.broadcast %cst_2 : f32 to vector<2x32xf32>
    %3 = arith.mulf %1, %2 : vector<2x32xf32>
    %c0_3 = arith.constant 0 : index
    %c0_4 = arith.constant 0 : index
    %4 = vector.load %arg2[%c0_3, %c0_4] : memref<32x128xf32, #tpu.memory_space<vmem>>, vector<32x128xf32>
    %cst_5 = arith.constant dense<0.000000e+00> : vector<2x128xf32>
    %5 = tpu.matmul %3, %4, %cst_5 {dimension_numbers = #tpu.dot_dimension_numbers<[1], [0], [0], [1], [0, 0, 1, 1], [], []>} : vector<2x32xf32>, vector<32x128xf32>, vector<2x128xf32> -> vector<2x128xf32>
    %c0_6 = arith.constant 0 : index
    %c0_7 = arith.constant 0 : index
    %6 = vector.load %arg3[%c0_6, %c0_7] : memref<1x128xf32, #tpu.memory_space<vmem>>, vector<1x128xf32>
    %7 = vector.broadcast %6 : vector<1x128xf32> to vector<2x128xf32>
    %8 = arith.addf %5, %7 : vector<2x128xf32>
    %cst_8 = arith.constant dense<0xFF800000> : vector<2xf32>
    %9 = vector.multi_reduction <maximumf>, %8, %cst_8 [1] : vector<2x128xf32> to vector<2xf32>
    %10 = vector.shape_cast %9 : vector<2xf32> to vector<2x1xf32>
    %11 = tpu.iota {dimensions = array<i32: 1>} : vector<2x128xi32>
    %c10_i32 = arith.constant 10 : i32
    %12 = vector.broadcast %c10_i32 : i32 to vector<2x128xi32>
    %13 = arith.cmpi slt, %11, %12 : vector<2x128xi32>
    %14 = vector.broadcast %10 : vector<2x1xf32> to vector<2x128xf32>
    %15 = arith.subf %8, %14 : vector<2x128xf32>
    %16 = math.exp %15 : vector<2x128xf32>
    %cst_9 = arith.constant 0.000000e+00 : f32
    %17 = vector.broadcast %cst_9 : f32 to vector<2x128xf32>
    %18 = arith.select %13, %16, %17 : vector<2x128xi1>, vector<2x128xf32>
    %cst_10 = arith.constant dense<0.000000e+00> : vector<2xf32>
    %19 = vector.multi_reduction <add>, %18, %cst_10 [1] : vector<2x128xf32> to vector<2xf32>
    %20 = vector.shape_cast %19 : vector<2xf32> to vector<2x1xf32>
    %21 = vector.broadcast %20 : vector<2x1xf32> to vector<2x128xf32>
    %22 = arith.divf %18, %21 : vector<2x128xf32>
    %c0_11 = arith.constant 0 : index
    %c0_12 = arith.constant 0 : index
    %23 = vector.load %arg4[%c0_11, %c0_12] : memref<2x128xf32, #tpu.memory_space<vmem>>, vector<2x128xf32>
    tpu.vector_store %arg4[%c0_11, %c0_12], %22 {strides = array<i32>} : memref<2x128xf32, #tpu.memory_space<vmem>>, vector<2x128xf32>,
    return
  }
  func.func @transform_0(%arg0: i32) -> (i32, i32, i32) {
    %c0_i32 = arith.constant 0 : i32
    %c0_i32_0 = arith.constant 0 : i32
    %c0_i32_1 = arith.constant 0 : i32
    return %arg0, %c0_i32, %c0_i32_0 : i32, i32, i32
  }
  func.func @transform_1(%arg0: i32) -> (i32, i32) {
    %c0_i32 = arith.constant 0 : i32
    %c0_i32_0 = arith.constant 0 : i32
    %c0_i32_1 = arith.constant 0 : i32
    return %c0_i32, %c0_i32_0 : i32, i32
  }
  func.func @transform_2(%arg0: i32) -> (i32, i32) {
    %c0_i32 = arith.constant 0 : i32
    %c0_i32_0 = arith.constant 0 : i32
    %c0_i32_1 = arith.constant 0 : i32
    return %c0_i32, %c0_i32_0 : i32, i32
  }
  func.func @transform_3(%arg0: i32) -> (i32, i32) {
    %c0_i32 = arith.constant 0 : i32
    %c0_i32_0 = arith.constant 0 : i32
    return %arg0, %c0_i32 : i32, i32
  }
}

</mosaic_0001>

<bundles_post_ra>
// kernel: tpu_custom_call.1
= control target key start
LH: loop header
LB: loop body
LE: loop exit
PB: predicated region body
PF: predicated region fallthrough
CT: control target
= control target key end

     0   :  { %8 = vsyncpa [#allocation3], 0  ;;  %s319_s0 = inlined_call_operand.hbm [shape: f32[2,8,32], index: 0, kind: input, shape index: {}]   ;;  %s320_s1 = inlined_call_operand.hbm [shape: f32[32,128], index: 1, kind: input, shape index: {}]   ;;  %s321_s2 = inlined_call_operand.vmem [shape: f32[1,128], index: 2, kind: input, shape index: {}]   ;;  %s322_s3 = inlined_call_operand.hbm [shape: f32[2,128], index: 3, kind: output, shape index: {}]  }
   0x1   :  { %9 = vsyncpa [#allocation6], 0 }
   0x2   :  { %10 = vsyncpa [#allocation4], 0  ;;  %s277_s12 = smov [#allocation2]  }
   0x3   :  { %s16_s13 = sshll.u32 %s277_s12, 4  ;;  %s17_s13 = int_to_ptr.vmem [resolvable:$true] %s16_s13 }
   0x4   :  { %s219_s14 = scalar_lea.vmem %s17_s13, 256  ;;  %p224_p1 = scmp.lt.s32.totalorder %s17_s13, %s17_s13 }
   0x5   :  { %p220_p0 = scmp.ne.s32.totalorder %s17_s13, %s219_s14  ;;  %p225_p2 = scmp.lt.s32.totalorder %s219_s14, %s219_s14 }
   0x7   :  { %p226_p3 = por %p225_p2, %p224_p1 }
   0x9   :  { %p227_p4 = pnand %p226_p3, %p220_p0 }
   0xb   :  { %230 = shalt.err (!%p227_p4)
}
   0xc   :  { %s278_s15 = smov 128   ;;  %s279_s16 = smov 8  }
   0xd   :  { %22 = dma.hbm_to_vmem [thread:$0]  %s319_s0, 256, %s17_s13, [#allocation3], %s278_s15, %s278_s15, %s279_s16  }
   0xe   :  { %s280_s19 = smov [#allocation5]  }
   0xf   :  { %s28_s20 = sshll.u32 %s280_s19, 4  ;;  %s29_s20 = int_to_ptr.vmem [resolvable:$true] %s28_s20 }
  0x10   :  { %s239_s21 = scalar_lea.vmem %s29_s20, 512  ;;  %p244_p6 = scmp.lt.s32.totalorder %s29_s20, %s29_s20 }
  0x11   :  { %p240_p5 = scmp.ne.s32.totalorder %s29_s20, %s239_s21  ;;  %p245_p7 = scmp.lt.s32.totalorder %s239_s21, %s239_s21 }
  0x13   :  { %p246_p8 = por %p245_p7, %p244_p6 }
  0x15   :  { %p247_p9 = pnand %p246_p8, %p240_p5 }
  0x17   :  { %250 = shalt.err (!%p247_p9)
}
  0x18   :  { %34 = dma.hbm_to_vmem [thread:$0]  %s320_s1, 512, %s29_s20, [#allocation6], %s278_s15, %s278_s15, %s279_s16  }
  0x19   :  { %271 = dma.done.wait [#allocation3], 256  }
  0x1a   :  { %272 = vsyncadd [#allocation3], 4294967040 }
  0x1b   :  { %273 = dma.done.wait [#allocation6], 512  }
  0x1c   :  { %274 = vsyncadd [#allocation6], 4294966784  ;;  %v281_v0 = vmov 0.0   ;;  %vm282_vm0 = vmmov 0   ;;  %vm45_vm1 = vcmask 261120   ;;  %v65_v1 = vld [vmem:[#allocation5 + $0x18] sm:$0xff]  ;;  %v153_v32 = vlaneseq }
  0x1d   :  { %189 = vmatprep.subr.mxu0 %v281_v0  ;;  %197 = vmatprep.mubr.msk.f32.mxu0 %vm282_vm0, %v281_v0  ;;  %v64_v2 = vld [vmem:[#allocation5 + $0x10] sm:$0xff]  ;;  %v44_v4 = vld [vmem:[#allocation2 + $0x8] sm:$0xff]  ;;  %v63_v5 = vld [vmem:[#allocation5 + $0x8] sm:$0xff]  ;;  %vm75_vm2 = vcmask 1041409   ;;  %vm149_vm3 = vcmask 1041408  }
  0x1e   :  { %190 = vmatpush3.msra.mxu0 %v65_v1  ;;  %v43_v3 = vld [vmem:[#allocation2] sm:$0xff]  ;;  %v53_v7 = vsel %vm45_vm1, %v44_v4, 0.0  ;;  %v62_v10 = vld [vmem:[#allocation5] sm:$0xff]  ;;  %v154_v33 = vand.u32 127, %v153_v32 }
  0x1f   :  { %191 = vmatprep.subr.mxu0 %v281_v0  ;;  %v46_v6 = vsel %vm45_vm1, %v43_v3, 0.0  ;;  %v54_v9 = vrot.slane %v53_v7, 4  ;;  %v182_v24 = vld [vmem:[%s321_s2] ss:$0 sm:$0xff]  ;;  %s283_s2 = smov [#allocation7]  }
  0x20   :  { %192 = vmatpush3.msra.mxu0 %v64_v2  ;;  %v47_v8 = vrot.slane %v46_v6, 4  ;;  %vm155_vm4 = vcmp.lt.s32.totalorder %v154_v33, 10  ;;  %s172_s24 = sshll.u32 %s283_s2, 4  ;;  %s173_s24 = int_to_ptr.vmem [resolvable:$true] %s172_s24 }
  0x21   :  { %193 = vmatprep.subr.mxu0 %v281_v0  ;;  %v55_v12 = vadd.f32 %v54_v9, %v53_v7  ;;  %s251_s25 = scalar_lea.vmem %s173_s24, 32  ;;  %p256_p11 = scmp.lt.s32.totalorder %s173_s24, %s173_s24 }
  0x22   :  { %194 = vmatpush3.msra.mxu0 %v63_v5  ;;  %v48_v11 = vadd.f32 %v47_v8, %v46_v6  ;;  %p252_p10 = scmp.ne.s32.totalorder %s173_s24, %s251_s25  ;;  %p257_p12 = scmp.lt.s32.totalorder %s251_s25, %s251_s25 }
  0x23   :  { %195 = vmatprep.subr.mxu0 %v281_v0  ;;  %v56_v14 = vrot.slane %v55_v12, 2 }
  0x24   :  { %196 = vmatpush3.msra.mxu0 %v62_v10  ;;  %v49_v13 = vrot.slane %v48_v11, 2  ;;  %p258_p13 = por %p257_p12, %p256_p11 }
  0x25   :  { %v57_v16 = vadd.f32 %v56_v14, %v55_v12 }
  0x26   :  { %v50_v15 = vadd.f32 %v49_v13, %v48_v11  ;;  %p259_p0 = pnand %p258_p13, %p252_p10 }
  0x27   :  { %v58_v18 = vrot.slane %v57_v16, 1 }
  0x28   :  { %v51_v17 = vrot.slane %v50_v15, 1 }
  0x29   :  { %v59_v20 = vadd.f32 %v58_v18, %v57_v16 }
  0x2a   :  { %v52_v19 = vadd.f32 %v51_v17, %v50_v15 }
  0x2b   :  { %v61_v22 = vmul.f32 0.125, %v59_v20 }
  0x2c   :  { %v60_v21 = vmul.f32 0.125, %v52_v19 }
  0x2e   :  { %v76_v23 = vsel %vm75_vm2, %v61_v22, %v60_v21 }
  0x2f   :  { %198 = vmatmul.mubr.msk.f32.vlgmr.msra.gmra.mxu0 %vm45_vm1, %v76_v23 }
  0xef   :  { %v145_v25 = vpop.f32.mrf.mxu0 }
  0xf0   :  { %v146_v26 = vadd.f32 %v182_v24, %v145_v25 }
  0xf1   :  { %v199_v27 = vpop.f32.mrf.mxu0 }
  0xf2   :  { %v150_v28 = vsel %vm149_vm3, %v146_v26, -inf }
  0xf3   :  { %151 = vmax.xlane.f32.xlu0 %v150_v28 }
 0x17c   :  { %v152_v29 = vpop.xlane.xlu0 %151 }
 0x17d   :  { %v156_v30 = vsub.f32 %v146_v26, %v152_v29 }
 0x17f   :  { %v157_v31 = vmul.f32 1.442695, %v156_v30 }
 0x181   :  { %207 = vpow2.f32 %v157_v31 }
 0x18e   :  { %v208_v34 = vpop.eup %207 }
 0x18f   :  { %v159_v35 = vsel %vm155_vm4, %v208_v34, 0.0 }
 0x190   :  { %v160_v36 = vsel %vm149_vm3, %v159_v35, 0.0 }
 0x191   :  { %161 = vadd.xlane.f32.xlu0 %v160_v36 }
 0x21a   :  { %v162_v37 = vpop.xlane.xlu0 %161 }
 0x21b   :  { %209 = vrcp.f32 %v162_v37 }
 0x228   :  { %v210_v38 = vpop.eup %209 }
 0x229   :  { %v164_v39 = vmul.f32 %v210_v38, %v159_v35 }
 0x22b   :  { %165 = vst [vmem:[#allocation7] sm:$0x3] %v164_v39 }
 0x22c   :  { %262 = shalt.err (!%p259_p0)
}
 0x22d   :  { %175 = dma.vmem_to_hbm [thread:$0]  %s173_s24, 32, %s322_s3, [#allocation4]  }
 0x22e   :  { %275 = dma.done.wait [#allocation4], 32  }
 0x22f   :  { %276 = vsyncadd [#allocation4], 4294967264 }
 0x230   :  { %179 = vsyncpa [#allocation3], 1 }
 0x231   :  { %180 = vsyncpa [#allocation6], 1 }
 0x232   :  { %181 = vsyncpa [#allocation4], 1 }

</bundles_post_ra>
